<compile_context>
chip_gen: v5e
topology: v5e:2x2
jax: 0.10.0
libtpu: 0.0.40
codegen_flags: <defaults>
</compile_context>

<pallas_src>
import functools
import math

import jax
import jax.numpy as jnp
from jax.experimental import pallas as pl
from jax.experimental.pallas import tpu as pltpu


def _sparsity_kernel(q_ref, g_ref, gamma_ref, kl_ref, *, k, log_p, log_1mp, kl_scale):
    # q_ref: (1, L) f32 -- lane 0 and lanes > k are padding; lanes 1..k hold q_gamma_params.
    # g_ref: (2, L) f32 -- Gumbel(0,1) noise, row 0 for the +q logit, row 1 for the -q logit.
    q = q_ref[...]            # single vld -> one vreg
    g = g_ref[...]            # single vld
    g0 = g[0:1, :]            # sublane slice of the loaded value (no reload)
    g1 = g[1:2, :]

    # Shared transcendentals: one exp + one log1p per lane.
    e = jnp.exp(-jnp.abs(q))
    lp0 = jnp.minimum(q, 0.0) - jnp.log1p(e)    # logsigmoid(q)
    lp1 = lp0 - q                               # logsigmoid(-q) == logsigmoid(q) - q

    # Hard gumbel-softmax forward value over dim=0 == argmax(log_prob + gumbel);
    # the /tau does not change the argmax, so it is dropped (forward-equivalent).
    ind = jnp.where(lp0 + g0 >= lp1 + g1, 1.0, 0.0)   # (1, L), padding lanes are garbage

    lane = jax.lax.broadcasted_iota(jnp.int32, q.shape, 1)
    valid = (lane >= 1) & (lane <= k)                  # real parameter lanes 1..k

    # Full lane-dense gamma slab in one unmasked store:
    #   lane 0 -> 1.0, lanes 1..k -> indicator, padding lanes -> 0.
    gamma_ref[...] = jnp.where(lane == 0, 1.0, jnp.where(valid, ind, 0.0))

    # Bernoulli KL( sigmoid(q) || prior_prob ); sigmoid(q) = exp(logsigmoid(q)) -> no divide.
    q_prob = jnp.exp(lp0)
    kl_k = q_prob * (lp0 - log_p) + (1.0 - q_prob) * (lp1 - log_1mp)
    kl_ref[0, 0] = jnp.float32(kl_scale) * jnp.sum(jnp.where(valid, kl_k, 0.0))


def sparsity_indicator_forward(q_slab, gumbel_slab, *, num_assemblages, tau, prior_prob,
                               kl_scale=1.0):
    """Forward pass.

    q_slab:      (1, L) f32, L a multiple of 128.  Lane 0 and lanes >= num_assemblages are
                 padding; lanes 1..num_assemblages-1 hold q_gamma_params (persisted in this
                 layout at init time -> zero per-call repack).
    gumbel_slab: (2, L) f32 Gumbel(0,1) samples (padding lanes ignored).

    Returns (gamma_row, KL): gamma_row has shape (L,); its lanes 0..num_assemblages-1 are the
    module's gamma (gamma[0] == 1.0), remaining lanes are 0.  KL is a scalar.
    `tau` is accepted for API parity; the hard forward value is temperature-independent.
    """
    del tau  # not needed for the hard (argmax) forward value
    assert q_slab.ndim == 2 and q_slab.shape[0] == 1
    l = q_slab.shape[1]
    assert l % 128 == 0 and num_assemblages <= l
    assert gumbel_slab.shape == (2, l)
    k = num_assemblages - 1

    kernel = functools.partial(
        _sparsity_kernel,
        k=k,
        log_p=math.log(float(prior_prob)),
        log_1mp=math.log1p(-float(prior_prob)),
        kl_scale=float(kl_scale))

    gamma2d, kl = pl.pallas_call(
        kernel,
        out_shape=(
            jax.ShapeDtypeStruct((1, l), jnp.float32),   # lane-dense gamma slab
            jax.ShapeDtypeStruct((1, 1), jnp.float32),   # KL scalar
        ),
        in_specs=[
            pl.BlockSpec(memory_space=pltpu.MemorySpace.VMEM),
            pl.BlockSpec(memory_space=pltpu.MemorySpace.VMEM),
        ],
        out_specs=(
            pl.BlockSpec(memory_space=pltpu.MemorySpace.VMEM),
            pl.BlockSpec(memory_space=pltpu.MemorySpace.SMEM),
        ),
    )(q_slab, gumbel_slab)

    return gamma2d[0], kl[0, 0]


if __name__ == "__main__":
    # Module config (synthetic, deterministic init -- no checkpoint load).
    num_assemblages = 20
    K = num_assemblages - 1
    prior_prob = 0.5 / num_assemblages
    kl_scale_multiplier = 1.0
    start_temp, end_temp = 0.5, 0.01
    # AnnealedParameter.set_temp(epoch=0, num_epochs=100): percent < 0.1 -> start_temp
    tau = start_temp

    LANES = 128  # lane-dense slab width (>= num_assemblages, multiple of 128)

    key = jax.random.PRNGKey(0)
    k_param, k_gumbel = jax.random.split(key)

    # torch.nn.init.uniform_ -> U[0, 1).  The parameter is persisted at init time directly in
    # the kernel's lane-shifted, lane-dense layout (lane 0 pad, lanes 1..K real) so the forward
    # pass needs no repacking op at all.
    q_real = jax.random.uniform(k_param, (K,), dtype=jnp.float32)
    q_slab = jnp.zeros((1, LANES), jnp.float32).at[0, 1:K + 1].set(q_real)

    # Gumbel noise for the (2, K) stacked logits (gumbel_softmax's internal sampling),
    # sampled straight into the slab layout (padding lanes ignored by the kernel).
    gumbel_slab = jax.random.gumbel(k_gumbel, (2, LANES), dtype=jnp.float32)

    gamma_row, kl = sparsity_indicator_forward(
        q_slab, gumbel_slab, num_assemblages=num_assemblages, tau=tau,
        prior_prob=prior_prob, kl_scale=kl_scale_multiplier)
    gamma_row, kl = jax.block_until_ready((gamma_row, kl))

    # Consumers take lanes 0..K of the lane-dense slab.
    gamma = gamma_row[:num_assemblages]

    # Structural checks (match the PyTorch module's invariants).
    assert gamma.shape == (num_assemblages,)
    assert float(gamma[0]) == 1.0
    assert not bool(jnp.isnan(gamma_row).any()), "nan in gamma"
    assert bool(jnp.all((gamma == 0.0) | (gamma == 1.0)))
    assert bool(jnp.all(gamma_row[num_assemblages:] == 0.0))   # padding lanes zeroed
    assert not bool(jnp.isnan(kl))

    # Reference check against plain jnp.
    lp0 = jax.nn.log_sigmoid(q_real)
    lp1 = jax.nn.log_sigmoid(-q_real)
    g_used = gumbel_slab[:, 1:K + 1]
    y0 = lp0 + g_used[0]
    y1 = lp1 + g_used[1]
    ind_ref = jnp.where(y0 >= y1, 1.0, 0.0)
    qp = jax.nn.sigmoid(q_real)
    kl_ref = kl_scale_multiplier * jnp.sum(
        qp * (lp0 - math.log(prior_prob)) + (1.0 - qp) * (lp1 - math.log1p(-prior_prob)))
    # Only compare decisions with a non-trivial margin (ties are rounding-sensitive).
    clear = jnp.abs(y0 - y1) > 1e-4
    assert bool(jnp.all((gamma[1:] == ind_ref) | ~clear))
    assert abs(float(kl) - float(kl_ref)) <= 1e-3 * max(1.0, abs(float(kl_ref)))

    print("KERNEL_OK")
</pallas_src>

<mosaic_0001>
module attributes {stable_mosaic.version = 11 : i64} {
  func.func @_sparsity_kernel(%arg0: memref<1x128xf32, #tpu.memory_space<vmem>>, %arg1: memref<2x128xf32, #tpu.memory_space<vmem>>, %arg2: memref<1x128xf32, #tpu.memory_space<vmem>>, %arg3: memref<1x1xf32, #tpu.memory_space<smem>>) attributes {dimension_semantics = [], scalar_prefetch = 0 : i64, scratch_operands = 0 : i64, tpu.core_type = #tpu.core_type<tc>} {
    %c0 = arith.constant 0 : index
    %c0_0 = arith.constant 0 : index
    %0 = vector.load %arg0[%c0, %c0_0] : memref<1x128xf32, #tpu.memory_space<vmem>>, vector<1x128xf32>
    %c0_1 = arith.constant 0 : index
    %c0_2 = arith.constant 0 : index
    %1 = vector.load %arg1[%c0_1, %c0_2] : memref<2x128xf32, #tpu.memory_space<vmem>>, vector<2x128xf32>
    %2 = vector.extract_strided_slice %1 {offsets = [0, 0], sizes = [1, 128], strides = [1, 1]} : vector<2x128xf32> to vector<1x128xf32>
    %3 = vector.extract_strided_slice %1 {offsets = [1, 0], sizes = [1, 128], strides = [1, 1]} : vector<2x128xf32> to vector<1x128xf32>
    %4 = math.absf %0 : vector<1x128xf32>
    %cst = arith.constant 0.000000e+00 : f32
    %5 = vector.broadcast %cst : f32 to vector<1x128xf32>
    %6 = arith.subf %5, %4 : vector<1x128xf32>
    %7 = math.exp %6 : vector<1x128xf32>
    %cst_3 = arith.constant 0.000000e+00 : f32
    %8 = vector.broadcast %cst_3 : f32 to vector<1x128xf32>
    %9 = arith.minimumf %0, %8 : vector<1x128xf32>
    %10 = math.log1p %7 : vector<1x128xf32>
    %11 = arith.subf %9, %10 : vector<1x128xf32>
    %12 = arith.subf %11, %0 : vector<1x128xf32>
    %13 = arith.addf %11, %2 : vector<1x128xf32>
    %14 = arith.addf %12, %3 : vector<1x128xf32>
    %15 = arith.cmpf oge, %13, %14 : vector<1x128xf32>
    %cst_4 = arith.constant 1.000000e+00 : f32
    %cst_5 = arith.constant 0.000000e+00 : f32
    %16 = vector.broadcast %cst_4 : f32 to vector<1x128xf32>
    %17 = vector.broadcast %cst_5 : f32 to vector<1x128xf32>
    %18 = arith.select %15, %16, %17 : vector<1x128xi1>, vector<1x128xf32>
    %19 = tpu.iota {dimensions = array<i32: 1>} : vector<1x128xi32>
    %c1_i32 = arith.constant 1 : i32
    %20 = vector.broadcast %c1_i32 : i32 to vector<1x128xi32>
    %21 = arith.cmpi sge, %19, %20 : vector<1x128xi32>
    %c19_i32 = arith.constant 19 : i32
    %22 = vector.broadcast %c19_i32 : i32 to vector<1x128xi32>
    %23 = arith.cmpi sle, %19, %22 : vector<1x128xi32>
    %24 = arith.andi %21, %23 : vector<1x128xi1>
    %c0_i32 = arith.constant 0 : i32
    %25 = vector.broadcast %c0_i32 : i32 to vector<1x128xi32>
    %26 = arith.cmpi eq, %19, %25 : vector<1x128xi32>
    %cst_6 = arith.constant 0.000000e+00 : f32
    %27 = vector.broadcast %cst_6 : f32 to vector<1x128xf32>
    %28 = arith.select %24, %18, %27 : vector<1x128xi1>, vector<1x128xf32>
    %cst_7 = arith.constant 1.000000e+00 : f32
    %29 = vector.broadcast %cst_7 : f32 to vector<1x128xf32>
    %30 = arith.select %26, %29, %28 : vector<1x128xi1>, vector<1x128xf32>
    %c0_8 = arith.constant 0 : index
    %c0_9 = arith.constant 0 : index
    %31 = vector.load %arg2[%c0_8, %c0_9] : memref<1x128xf32, #tpu.memory_space<vmem>>, vector<1x128xf32>
    tpu.vector_store %arg2[%c0_8, %c0_9], %30 {strides = array<i32>} : memref<1x128xf32, #tpu.memory_space<vmem>>, vector<1x128xf32>,
    %32 = math.exp %11 : vector<1x128xf32>
    %cst_10 = arith.constant -3.68887949 : f32
    %33 = vector.broadcast %cst_10 : f32 to vector<1x128xf32>
    %34 = arith.subf %11, %33 : vector<1x128xf32>
    %35 = arith.mulf %32, %34 : vector<1x128xf32>
    %cst_11 = arith.constant 1.000000e+00 : f32
    %36 = vector.broadcast %cst_11 : f32 to vector<1x128xf32>
    %37 = arith.subf %36, %32 : vector<1x128xf32>
    %cst_12 = arith.constant -0.0253178086 : f32
    %38 = vector.broadcast %cst_12 : f32 to vector<1x128xf32>
    %39 = arith.subf %12, %38 : vector<1x128xf32>
    %40 = arith.mulf %37, %39 : vector<1x128xf32>
    %41 = arith.addf %35, %40 : vector<1x128xf32>
    %cst_13 = arith.constant 0.000000e+00 : f32
    %42 = vector.broadcast %cst_13 : f32 to vector<1x128xf32>
    %43 = arith.select %24, %41, %42 : vector<1x128xi1>, vector<1x128xf32>
    %44 = vector.shape_cast %43 : vector<1x128xf32> to vector<1x1x128xf32>
    %cst_14 = arith.constant dense<0.000000e+00> : vector<1xf32>
    %45 = vector.multi_reduction <add>, %44, %cst_14 [1, 2] : vector<1x1x128xf32> to vector<1xf32>
    %46 = vector.shape_cast %45 : vector<1xf32> to vector<1x1x1xf32>
    %47 = vector.extract %46[0, 0, 0] : f32 from vector<1x1x1xf32>
    %cst_15 = arith.constant 1.000000e+00 : f32
    %48 = arith.mulf %cst_15, %47 : f32
    %c0_16 = arith.constant 0 : index
    %c0_17 = arith.constant 0 : index
    %49 = memref.load %arg3[%c0_16, %c0_17] : memref<1x1xf32, #tpu.memory_space<smem>>
    memref.store %48, %arg3[%c0_16, %c0_17] : memref<1x1xf32, #tpu.memory_space<smem>>
    return
  }
}

</mosaic_0001>

<bundles_post_ra>
// kernel: tpu_custom_call.1
= control target key start
LH: loop header
LB: loop body
LE: loop exit
PB: predicated region body
PF: predicated region fallthrough
CT: control target
= control target key end

     0   :  { %9 = vsyncpa [#allocation3], 0  ;;  %s278_s0 = inlined_call_operand.hbm [shape: f32[1,128], index: 0, kind: input, shape index: {}]   ;;  %s279_s1 = inlined_call_operand.hbm [shape: f32[2,128], index: 1, kind: input, shape index: {}]   ;;  %s280_s2 = inlined_call_operand.hbm [shape: f32[1,128], index: 2, kind: output, shape index: {0}]   ;;  %s281_s3 = inlined_call_operand.hbm [shape: f32[1,1], index: 3, kind: output, shape index: {1}]  }
   0x1   :  { %10 = vsyncpa [#allocation7], 0 }
   0x2   :  { %11 = vsyncpa [#allocation4], 0 }
   0x3   :  { %12 = vsyncpa [#allocation5], 0  ;;  %s18_s14 = sshll.u32 %s278_s0, 4  ;;  %s241_s15 = smov [#allocation2]   ;;  %s19_s14 = int_to_ptr.hbm [resolvable:$true] %s18_s14 }
   0x4   :  { %s20_s16 = sshll.u32 %s241_s15, 4  ;;  %s29_s19 = sshll.u32 %s279_s1, 4  ;;  %s21_s16 = int_to_ptr.vmem [resolvable:$true] %s20_s16  ;;  %s30_s19 = int_to_ptr.hbm [resolvable:$true] %s29_s19 }
   0x5   :  { %23 = dma.hbm_to_vmem [thread:$0]  %s19_s14, 16, %s21_s16, [#allocation3]  }
   0x6   :  { %s242_s20 = smov [#allocation6]  }
   0x7   :  { %s31_s21 = sshll.u32 %s242_s20, 4  ;;  %s32_s21 = int_to_ptr.vmem [resolvable:$true] %s31_s21 }
   0x8   :  { %34 = dma.hbm_to_vmem [thread:$0]  %s30_s19, 32, %s32_s21, [#allocation7]  }
   0x9   :  { %233 = dma.done.wait [#allocation3], 16  }
   0xa   :  { %234 = vsyncadd [#allocation3], 4294967280 }
   0xb   :  { %235 = dma.done.wait [#allocation7], 32  }
   0xc   :  { %236 = vsyncadd [#allocation7], 4294967264  ;;  %v43_v0 = vld [vmem:[#allocation2] sm:$0x1]  ;;  %v44_v1 = vld [vmem:[#allocation6] sm:$0x3]  ;;  %v70_v13 = vlaneseq }
   0xd   :  { %v45_v2 = vand.u32 2147483647, %v43_v0  ;;  %63 = vst [vmem:[#allocation1] sm:$0xff] %v44_v1  ;;  %v49_v12 = vmin.f32 %v43_v0, 0.0  ;;  %v243_v23 = vmov 0.0   ;;  %vm88_vm6 = vcmask 1040384  }
   0xe   :  { %v71_v17 = vand.u32 127, %v70_v13  ;;  %s244_s0 = smov [#allocation8]   ;;  %s108_s24 = sshll.u32 %s280_s2, 4  ;;  %s109_s24 = int_to_ptr.hbm [resolvable:$true] %s108_s24 }
   0xf   :  { %v46_v3 = vsub.f32 0.0, %v45_v2  ;;  %s106_s1 = sshll.u32 %s244_s0, 4  ;;  %s117_s27 = sshll.u32 %s281_s3, 4  ;;  %s107_s1 = int_to_ptr.vmem [resolvable:$true] %s106_s1  ;;  %s118_s27 = int_to_ptr.hbm [resolvable:$true] %s117_s27 }
  0x10   :  { %vm72_vm1 = vcmp.ge.s32.totalorder %v71_v17, 1  ;;  %vm73_vm2 = vcmp.le.s32.totalorder %v71_v17, 19  ;;  %vm75_vm4 = vcmp.eq.s32.totalorder %v71_v17, 0  ;;  %s245_s29 = smov [#allocation9]  }
  0x11   :  { %v47_v4 = vmul.f32 1.442695, %v46_v3  ;;  %vm74_vm5 = vmand %vm72_vm1, %vm73_vm2 }
  0x13   :  { %143 = vpow2.f32 %v47_v4 }
  0x14   :  { %v65_v18 = vld [vmem:[#allocation1 + $0x1] ss:$9 sm:$0xff] }
  0x19   :  { %v144_v5 = vpop.eup %143 }
  0x1a   :  { %v50_v6 = vadd.f32 1.0, %v144_v5  ;;  %v53_v7 = vmul.f32 -0.5, %v144_v5  ;;  %v56_v9 = vand.u32 2147483647, %v144_v5 }
  0x1c   :  { %145 = vlog2.f32 %v50_v6  ;;  %v54_v8 = vadd.f32 1.0, %v53_v7  ;;  %vm57_vm0 = vcmp.lt.f32.partialorder %v56_v9, 0.0004427343 }
  0x1e   :  { %v55_v10 = vmul.f32 %v144_v5, %v54_v8 }
  0x22   :  { %v146_v11 = vpop.eup %145 }
  0x23   :  { %v52_v14 = vmul.f32 0.6931472, %v146_v11 }
  0x25   :  { %v58_v15 = vsel %vm57_vm0, %v55_v10, %v52_v14 }
  0x26   :  { %v59_v16 = vsub.f32 %v49_v12, %v58_v15 }
  0x28   :  { %v60_v19 = vsub.f32 %v59_v16, %v43_v0  ;;  %v61_v20 = vadd.f32 %v59_v16, %v44_v1  ;;  %v79_v21 = vmul.f32 1.442695, %v59_v16  ;;  %v134_v25 = vadd.f32 3.6888795, %v59_v16 }
  0x2a   :  { %v67_v22 = vadd.f32 %v65_v18, %v60_v19  ;;  %147 = vpow2.f32 %v79_v21  ;;  %v135_v28 = vadd.f32 0.025317809, %v60_v19 }
  0x2c   :  { %vm68_vm3 = vcmp.ge.f32.partialorder %v61_v20, %v67_v22 }
  0x2d   :  { %v69_v24 = vsel %vm68_vm3, 1.0, %v243_v23 }
  0x2e   :  { %v76_v26 = vsel %vm74_vm5, %v69_v24, 0.0 }
  0x2f   :  { %v77_v27 = vsel %vm75_vm4, 1.0, %v76_v26 }
  0x30   :  { %v148_v29 = vpop.eup %147  ;;  %78 = vst [vmem:[#allocation8] sm:$0x1] %v77_v27 }
  0x31   :  { %v82_v30 = vmul.f32 %v148_v29, %v134_v25  ;;  %v83_v31 = vsub.f32 1.0, %v148_v29  ;;  %111 = dma.vmem_to_hbm [thread:$0]  %s107_s1, 16, %s109_s24, [#allocation4]  }
  0x33   :  { %v85_v32 = vmul.f32 %v135_v28, %v83_v31 }
  0x35   :  { %v86_v33 = vadd.f32 %v85_v32, %v82_v30 }
  0x37   :  { %v87_v34 = vsel %vm74_vm5, %v86_v33, 0.0 }
  0x38   :  { %v89_v35 = vsel %vm88_vm6, %v87_v34, 0.0 }
  0x39   :  { %90 = vadd.xlane.f32.xlu0 %v89_v35 }
  0xac   :  { %v91_v36 = vpop.xlane.xlu0 %90 }
  0xad   :  { %v92_v37 = vrot.slane %v91_v36, 4 }
  0xaf   :  { %v93_v38 = vadd.f32 %v92_v37, %v91_v36 }
  0xb1   :  { %v94_v39 = vrot.slane %v93_v38, 2 }
  0xb3   :  { %v95_v40 = vadd.f32 %v94_v39, %v93_v38 }
  0xb5   :  { %v96_v41 = vrot.slane %v95_v40, 1 }
  0xb7   :  { %v97_v42 = vadd.f32 %v96_v41, %v95_v40 }
  0xb9   :  { %136 = vpush %v97_v42 }
  0xea   :  { %s137_s28 = spop %136 }
  0xeb   :  { %100 = sst [smem:[#allocation9]] %s137_s28 }
  0xec   :  { %120 = dma.smem_to_hbm %s245_s29, 16, %s118_s27, [#allocation5]  }
  0xed   :  { %237 = dma.done.wait [#allocation4], 16  }
  0xee   :  { %238 = vsyncadd [#allocation4], 4294967280 }
  0xef   :  { %239 = dma.done.wait [#allocation5], 16  }
  0xf0   :  { %240 = vsyncadd [#allocation5], 4294967280 }
  0xf1   :  { %129 = sfence }
  0xf2   :  { %130 = vsyncpa [#allocation3], 1 }
  0xf3   :  { %131 = vsyncpa [#allocation7], 1 }
  0xf4   :  { %132 = vsyncpa [#allocation4], 1 }
  0xf5   :  { %133 = vsyncpa [#allocation5], 1 }

</bundles_post_ra>
